<compile_context>
chip_gen: v7x
topology: tpu7x:2x2x1
jax: 0.10.0
libtpu: 0.0.40
codegen_flags: <defaults>
</compile_context>

<pallas_src>
import math

import jax
import jax.numpy as jnp
from jax.experimental import pallas as pl
from jax.experimental.pallas import tpu as pltpu

_LANE = 128
_TARGET_TILE_BYTES = 2 * 1024 * 1024   # per x/out tile; 2x-buffered x+out+pe stays < 16 MiB


def make_positional_encoding(d_model: int, max_len: int = 10000,
                             dtype=jnp.float32) -> jnp.ndarray:
    """Deterministic parameter init, identical to the PyTorch __init__.

    Returns pe with shape (d_model, max_len) (the PyTorch buffer's leading
    batch dim of size 1 is dropped).
    """
    position = jnp.arange(0, max_len, dtype=jnp.float32)[:, None]            # (max_len, 1)
    div_term = jnp.exp(jnp.arange(0, d_model, 2, dtype=jnp.float32)
                       * -(math.log(10000.0) / d_model))                     # (ceil(d/2),)
    angles = position * div_term                                             # (max_len, ceil(d/2))
    pe = jnp.zeros((max_len, d_model), dtype=jnp.float32)
    pe = pe.at[:, 0::2].set(jnp.sin(angles)[:, : (d_model + 1) // 2])
    pe = pe.at[:, 1::2].set(jnp.cos(angles)[:, : d_model // 2])
    # PyTorch: pe.unsqueeze(0).permute(0, 2, 1) -> (1, d_model, max_len); drop the 1.
    return pe.T.astype(dtype)                                                # (d_model, max_len)


def _add_pe_kernel(x_ref, pe_ref, o_ref):
    # x_ref / o_ref: (tB, tD, tL); pe_ref: (tD, tL) -> broadcast over the batch sub-block.
    # Pure vld + vadd + vst stream; the leading-dim broadcast just reuses the pe vregs.
    o_ref[...] = (x_ref[...] + pe_ref[...][None, :, :]).astype(o_ref.dtype)


def _native_sublane(dtype) -> int:
    # Native (sublane, 128) vreg tile rows: 8 for 4-byte, 16 for 2-byte, 32 for 1-byte dtypes.
    return max(8, 32 // jnp.dtype(dtype).itemsize)


def _round_down(v: int, m: int) -> int:
    return max(m, (v // m) * m)


def _choose_tiles(B: int, D: int, L: int, dtype):
    """Pick (tB, tD, tL) so each x/out tile is ~_TARGET_TILE_BYTES and layout-legal."""
    itemsize = jnp.dtype(dtype).itemsize
    sub = _native_sublane(dtype)
    target_elems = max(1, _TARGET_TILE_BYTES // itemsize)

    # Lane axis first: as wide as possible (lane-dense output is the biggest single lever).
    min_rows = min(D, sub)
    lane_budget = _round_down(target_elems // max(1, min_rows), _LANE)
    if L <= lane_budget:
        tL = L                                     # full extent: legal for any L, no masking
    else:
        tL = lane_budget                           # multiple of 128; only boundary block masked

    # Sublane axis.
    rows_budget = max(1, target_elems // tL)
    if D <= rows_budget:
        tD = D                                     # full extent: legal for any D
        # Batch axis: pack several batches per block while the per-batch slab is still small.
        tB = min(B, max(1, target_elems // max(1, tD * tL)))
    else:
        tD = min(D, _round_down(rows_budget, sub)) # multiple of the native sublane count
        tB = 1
    return tB, tD, tL


def positional_encoding_forward(x: jnp.ndarray, pe: jnp.ndarray) -> jnp.ndarray:
    """x: (B, d_model, L); pe: (d_model, max_len), max_len >= L. Returns x + pe[None, :, :L]."""
    B, D, L = x.shape
    assert pe.shape[0] == D and pe.shape[1] >= L, "pe must be (d_model, max_len >= L)"

    tB, tD, tL = _choose_tiles(B, D, L, x.dtype)

    # pe handling: window the full (d_model, max_len) buffer directly when its dtype already
    # matches and the lane tile is legal for it; otherwise make one small (D, L) cast copy.
    if pe.dtype == x.dtype and (tL % _LANE == 0 or tL == pe.shape[1]):
        pe_used = pe
    else:
        pe_used = pe[:, :L].astype(x.dtype)

    # Batch innermost -> the pe block index is constant across consecutive steps (stays resident).
    grid = (pl.cdiv(D, tD), pl.cdiv(L, tL), pl.cdiv(B, tB))

    itemsize = jnp.dtype(x.dtype).itemsize
    cost = pl.CostEstimate(flops=B * D * L, transcendentals=0,
                           bytes_accessed=(2 * B * D * L + D * L) * itemsize)

    return pl.pallas_call(
        _add_pe_kernel,
        out_shape=jax.ShapeDtypeStruct((B, D, L), x.dtype),
        grid=grid,
        in_specs=[
            pl.BlockSpec((tB, tD, tL), lambda d, l, b: (b, d, l)),
            pl.BlockSpec((tD, tL), lambda d, l, b: (d, l)),
        ],
        out_specs=pl.BlockSpec((tB, tD, tL), lambda d, l, b: (b, d, l)),
        compiler_params=pltpu.CompilerParams(
            dimension_semantics=("parallel", "parallel", "parallel")),
        cost_estimate=cost,
    )(x, pe_used)


if __name__ == "__main__":
    key = jax.random.PRNGKey(0)
    k1, k2 = jax.random.split(key)
    fwd = jax.jit(positional_encoding_forward)

    # Config 1: small shape typical of the module (batch=2, d_model=32, seq_len=16), max_len=64.
    B, D, L, MAX_LEN = 2, 32, 16, 64
    x = jax.random.normal(k1, (B, D, L), dtype=jnp.float32)
    pe = make_positional_encoding(D, MAX_LEN)
    out = jax.block_until_ready(fwd(x, pe))
    ref = x + pe[None, :, :L]
    assert out.shape == x.shape and out.dtype == x.dtype
    assert jnp.allclose(out, ref, atol=1e-6, rtol=1e-6)

    # Config 2: lane-aligned seq length -> windows the full pe buffer directly (no pe copy).
    B2, D2, L2, MAX_LEN2 = 2, 8, 128, 256
    x2 = jax.random.normal(k2, (B2, D2, L2), dtype=jnp.float32)
    pe2 = make_positional_encoding(D2, MAX_LEN2)
    out2 = jax.block_until_ready(fwd(x2, pe2))
    ref2 = x2 + pe2[None, :, :L2]
    assert out2.shape == x2.shape and out2.dtype == x2.dtype
    assert jnp.allclose(out2, ref2, atol=1e-6, rtol=1e-6)

    print("KERNEL_OK")
</pallas_src>

<mosaic_0001>
module attributes {stable_mosaic.version = 11 : i64} {
  func.func @_add_pe_kernel(%arg0: i32, %arg1: i32, %arg2: i32, %arg3: memref<2x32x16xf32, #tpu.memory_space<vmem>>, %arg4: memref<32x16xf32, #tpu.memory_space<vmem>>, %arg5: memref<2x32x16xf32, #tpu.memory_space<vmem>>) attributes {dimension_semantics = [#tpu.dimension_semantics<parallel>, #tpu.dimension_semantics<parallel>, #tpu.dimension_semantics<parallel>], iteration_bounds = array<i64: 1, 1, 1>, scalar_prefetch = 0 : i64, scratch_operands = 0 : i64, tpu.core_type = #tpu.core_type<tc>, window_params = [{transform_indices = @transform_0, window_bounds = array<i64: 2, 32, 16>}, {transform_indices = @transform_1, window_bounds = array<i64: 32, 16>}, {transform_indices = @transform_2, window_bounds = array<i64: 2, 32, 16>}]} {
    %c0 = arith.constant 0 : index
    %c0_0 = arith.constant 0 : index
    %c0_1 = arith.constant 0 : index
    %0 = vector.load %arg3[%c0, %c0_0, %c0_1] : memref<2x32x16xf32, #tpu.memory_space<vmem>>, vector<2x32x16xf32>
    %c0_2 = arith.constant 0 : index
    %c0_3 = arith.constant 0 : index
    %1 = vector.load %arg4[%c0_2, %c0_3] : memref<32x16xf32, #tpu.memory_space<vmem>>, vector<32x16xf32>
    %2 = vector.shape_cast %1 : vector<32x16xf32> to vector<1x32x16xf32>
    %3 = vector.broadcast %2 : vector<1x32x16xf32> to vector<2x32x16xf32>
    %4 = arith.addf %0, %3 : vector<2x32x16xf32>
    %c0_4 = arith.constant 0 : index
    %c0_5 = arith.constant 0 : index
    %c0_6 = arith.constant 0 : index
    %5 = vector.load %arg5[%c0_4, %c0_5, %c0_6] : memref<2x32x16xf32, #tpu.memory_space<vmem>>, vector<2x32x16xf32>
    tpu.vector_store %arg5[%c0_4, %c0_5, %c0_6], %4 {strides = array<i32>} : memref<2x32x16xf32, #tpu.memory_space<vmem>>, vector<2x32x16xf32>,
    return
  }
  func.func @transform_0(%arg0: i32, %arg1: i32, %arg2: i32) -> (i32, i32, i32) {
    %c0_i32 = arith.constant 0 : i32
    return %arg2, %arg0, %arg1 : i32, i32, i32
  }
  func.func @transform_1(%arg0: i32, %arg1: i32, %arg2: i32) -> (i32, i32) {
    %c0_i32 = arith.constant 0 : i32
    return %arg0, %arg1 : i32, i32
  }
  func.func @transform_2(%arg0: i32, %arg1: i32, %arg2: i32) -> (i32, i32, i32) {
    %c0_i32 = arith.constant 0 : i32
    return %arg2, %arg0, %arg1 : i32, i32, i32
  }
}

</mosaic_0001>

<bundles_post_ra>
// kernel: positional_encoding_forward.1
= control target key start
LH: loop header
LB: loop body
LE: loop exit
PB: predicated region body
PF: predicated region fallthrough
CT: control target
= control target key end

     0   :  { %vm31_vm0 = vcmask 130048   ;;  %s127_s0 = inlined_call_operand.vmem [shape: f32[2,32,16], index: 0, kind: input, shape index: {}]   ;;  %s128_s1 = inlined_call_operand.vmem [shape: f32[32,16], index: 1, kind: input, shape index: {}]   ;;  %s129_s2 = inlined_call_operand.vmem [shape: f32[2,32,16], index: 2, kind: output, shape index: {}]  }
   0x1   :  { %v11_v0 = vld [vmem:[%s127_s0] sm:$0xff]  ;;  %v12_v2 = vld [vmem:[%s127_s0 + $0x8] sm:$0xff]  ;;  %v13_v5 = vld [vmem:[%s127_s0 + $0x10] sm:$0xff] }
   0x2   :  { %v19_v1 = vld [vmem:[%s128_s1] sm:$0xff]  ;;  %v20_v4 = vld [vmem:[%s128_s1 + $0x8] sm:$0xff]  ;;  %v21_v6 = vld [vmem:[%s128_s1 + $0x10] sm:$0xff] }
   0x3   :  { %v23_v3 = vadd.f32 %v19_v1, %v11_v0  ;;  %v24_v7 = vadd.f32 %v20_v4, %v12_v2  ;;  %v25_v8 = vadd.f32 %v21_v6, %v13_v5  ;;  %v14_v9 = vld [vmem:[%s127_s0 + $0x18] sm:$0xff]  ;;  %v15_v11 = vld [vmem:[%s127_s0 + $0x20] sm:$0xff]  ;;  %v16_v14 = vld [vmem:[%s127_s0 + $0x28] sm:$0xff] }
   0x4   :  { %v22_v10 = vld [vmem:[%s128_s1 + $0x18] sm:$0xff]  ;;  %v27_v13 = vadd.f32 %v19_v1, %v15_v11  ;;  %v17_v15 = vld [vmem:[%s127_s0 + $0x30] sm:$0xff]  ;;  %v28_v17 = vadd.f32 %v20_v4, %v16_v14 }
   0x5   :  { %32 = vst.msk [vmem:[%s129_s2] sm:$0xff] %vm31_vm0, %v23_v3  ;;  %v26_v12 = vadd.f32 %v22_v10, %v14_v9  ;;  %v18_v16 = vld [vmem:[%s127_s0 + $0x38] sm:$0xff]  ;;  %33 = vst.msk [vmem:[%s129_s2 + $0x8] sm:$0xff] %vm31_vm0, %v24_v7  ;;  %v29_v18 = vadd.f32 %v21_v6, %v17_v15 }
   0x6   :  { %34 = vst.msk [vmem:[%s129_s2 + $0x10] sm:$0xff] %vm31_vm0, %v25_v8  ;;  %v30_v19 = vadd.f32 %v22_v10, %v18_v16  ;;  %36 = vst.msk [vmem:[%s129_s2 + $0x20] sm:$0xff] %vm31_vm0, %v27_v13 }
   0x7   :  { %35 = vst.msk [vmem:[%s129_s2 + $0x18] sm:$0xff] %vm31_vm0, %v26_v12  ;;  %37 = vst.msk [vmem:[%s129_s2 + $0x28] sm:$0xff] %vm31_vm0, %v28_v17 }
   0x8   :  { %38 = vst.msk [vmem:[%s129_s2 + $0x30] sm:$0xff] %vm31_vm0, %v29_v18  ;;  %39 = vst.msk [vmem:[%s129_s2 + $0x38] sm:$0xff] %vm31_vm0, %v30_v19 }

</bundles_post_ra>
